<compile_context>
chip_gen: v5e
topology: v5e:2x2
jax: 0.10.0
libtpu: 0.0.40
codegen_flags: <defaults>
</compile_context>

<pallas_src>
import functools

import jax
import jax.numpy as jnp
from jax.experimental import pallas as pl
from jax.experimental.pallas import tpu as pltpu

OUT_DIM = 6
OUT_PAD = 128   # lane-dense output slab width


def _seg_sum_kernel(bv_ref, s_ref, seg_ref, cnt_ref, ids_ref, *,
                    total_rows, steps_per_split):
    """Accumulate per-graph segment sums and counts for one (core_split, step) tile."""
    c = pl.program_id(0)            # core split (parallel across TCs on v7x)
    k = pl.program_id(1)            # step within this split (reduction axis)
    B_pad = seg_ref.shape[0]
    TM = s_ref.shape[0]

    @pl.when(k == 0)
    def _():
        seg_ref[...] = jnp.zeros_like(seg_ref)
        cnt_ref[...] = jnp.zeros_like(cnt_ref)
        # Grid-invariant batch-id iota, built once per core split and reused.
        ids_ref[...] = jax.lax.broadcasted_iota(jnp.int32, (B_pad, TM), 0)

    # Logical first row of this tile (unclamped; phantom tiles -> fully invalid).
    row0 = (c * steps_per_split + k) * TM

    # Row-validity masks: the last real tile may extend past `total_rows`, and
    # phantom tiles (odd tile count split across 2 cores) are entirely invalid.
    rows_lane = row0 + jax.lax.broadcasted_iota(jnp.int32, (1, TM), 1)
    valid_lane = rows_lane < total_rows                   # (1, TM)  -> masks one-hot/counts
    rows_sub = row0 + jax.lax.broadcasted_iota(jnp.int32, (TM, 1), 0)
    valid_sub = rows_sub < total_rows                     # (TM, 1)  -> masks s (NaN-safe)

    bv = bv_ref[...]                                      # (1, TM) int32
    onehot = jnp.logical_and(ids_ref[...] == bv, valid_lane).astype(jnp.bfloat16)
    s_vals = s_ref[...]                                   # (TM, C) bf16
    s_tile = jnp.where(valid_sub, s_vals, jnp.zeros_like(s_vals))

    # Segment sum on the MXU (bf16 operands, f32 accumulation); counts on the XLU.
    seg_ref[...] += jnp.dot(onehot, s_tile, preferred_element_type=jnp.float32)
    cnt_ref[...] += jnp.sum(onehot.astype(jnp.float32), axis=1, keepdims=True)


def _mlp_epilogue_kernel(seg_ref, cnt_ref, w1_ref, b1_ref, w2_ref, b2_ref, out_ref):
    """Combine per-core partials, normalize (exact divide), run the tiny MLP head."""
    seg = jnp.sum(seg_ref[...], axis=0)                   # (B_pad, C)   f32
    cnt = jnp.sum(cnt_ref[...], axis=0)                   # (B_pad, 1)   f32
    mean = seg / jnp.maximum(cnt, 1.0)                    # exact division (runs once)
    h = jnp.dot(mean, w1_ref[...], preferred_element_type=jnp.float32) + b1_ref[...]
    h = jnp.maximum(h, 0.0)
    o = jnp.dot(h, w2_ref[...], preferred_element_type=jnp.float32) + b2_ref[...]
    out_ref[...] = jax.nn.softplus(o).astype(out_ref.dtype)


def lattice_output(s, batch_vec, params, num_batches, tile_m=16384):
    """s: (M, C) float32/bfloat16, batch_vec: (M,) int -> (num_batches, 6) float32."""
    M, C = s.shape
    w1, b1, w2, b2 = params

    # Stream s as bf16: the MXU path truncates to bf16 anyway, so this halves HBM bytes
    # and the double-buffered VMEM tile with no numerical change vs. the previous kernel.
    s_bf16 = s if s.dtype == jnp.bfloat16 else s.astype(jnp.bfloat16)
    bv = batch_vec.astype(jnp.int32).reshape(1, M)

    B_pad = max(8, ((num_batches + 7) // 8) * 8)

    # Tile sizing: big tiles amortize the ~0.35us/step pipeline overhead; multiples of
    # 256 keep the one-hot contraction in whole MXU passes on v6e/v7x.
    tile_m = max(256, (tile_m // 256) * 256)
    if M <= tile_m:
        tile_m = M                       # one tile spanning the full array (always legal)
        n_tiles = 1
    else:
        n_tiles = pl.cdiv(M, tile_m)     # last tile may be partial -> masked in-kernel

    # Split the M range across the two TensorCores on v7x (harmless on v5e/v6e).
    num_splits = 2 if n_tiles >= 2 else 1
    steps = -(-n_tiles // num_splits)    # cdiv

    def _tile(cc, kk):
        # Phantom steps (odd tile count) re-read the last real tile; their contribution
        # is zeroed in-kernel via the row-validity masks.
        return jnp.minimum(cc * steps + kk, n_tiles - 1)

    # Lane-dense output path: pad the last layer to 128 output lanes.
    w2p = jnp.pad(w2.astype(jnp.float32), ((0, 0), (0, OUT_PAD - w2.shape[1])))
    b2p = jnp.pad(b2.astype(jnp.float32), ((0, 0), (0, OUT_PAD - b2.shape[1])))

    seg, cnt = pl.pallas_call(
        functools.partial(_seg_sum_kernel, total_rows=M, steps_per_split=steps),
        out_shape=(
            jax.ShapeDtypeStruct((num_splits, B_pad, C), jnp.float32),
            jax.ShapeDtypeStruct((num_splits, B_pad, 1), jnp.float32),
        ),
        grid=(num_splits, steps),
        in_specs=[
            pl.BlockSpec((1, tile_m), lambda cc, kk: (0, _tile(cc, kk))),    # batch_vec
            pl.BlockSpec((tile_m, C), lambda cc, kk: (_tile(cc, kk), 0)),    # s (bf16)
        ],
        out_specs=[
            pl.BlockSpec((None, B_pad, C), lambda cc, kk: (cc, 0, 0)),       # seg partials
            pl.BlockSpec((None, B_pad, 1), lambda cc, kk: (cc, 0, 0)),       # cnt partials
        ],
        scratch_shapes=[pltpu.VMEM((B_pad, tile_m), jnp.int32)],             # batch-id iota
        compiler_params=pltpu.CompilerParams(
            dimension_semantics=("parallel", "arbitrary"),
            # Raise past v5e's 16 MiB scoped default; bf16 tiles keep actual use ~10 MiB,
            # safely inside v7x's 64 MiB physical VMEM.
            vmem_limit_bytes=48 * 1024 * 1024),
    )(bv, s_bf16)

    # Tiny single-shot epilogue kernel (whole arrays live in VMEM).
    out_full = pl.pallas_call(
        _mlp_epilogue_kernel,
        out_shape=jax.ShapeDtypeStruct((B_pad, OUT_PAD), jnp.float32),
    )(seg, cnt, w1.astype(jnp.float32), b1.astype(jnp.float32), w2p, b2p)

    return out_full[:num_batches, :OUT_DIM]


def init_params(key, c_s):
    """Deterministic init mimicking nn.Linear (uniform +-1/sqrt(fan_in))."""
    k1, k2, k3, k4 = jax.random.split(key, 4)
    bound1 = 1.0 / jnp.sqrt(c_s)
    w1 = jax.random.uniform(k1, (c_s, c_s), jnp.float32, -bound1, bound1)
    b1 = jax.random.uniform(k2, (1, c_s), jnp.float32, -bound1, bound1)
    w2 = jax.random.uniform(k3, (c_s, 6), jnp.float32, -bound1, bound1)
    b2 = jax.random.uniform(k4, (1, 6), jnp.float32, -bound1, bound1)
    return w1, b1, w2, b2


def _reference(s, batch_vec, params, num_batches):
    """Plain-JAX f32 reference for a sanity check."""
    w1, b1, w2, b2 = params
    onehot = (jnp.arange(num_batches)[:, None] == batch_vec[None, :]).astype(jnp.float32)
    seg_sum = onehot @ s
    counts = jnp.maximum(onehot.sum(axis=1, keepdims=True), 1.0)
    mean = seg_sum / counts
    h = jnp.maximum(mean @ w1 + b1, 0.0)
    return jax.nn.softplus(h @ w2 + b2)


if __name__ == "__main__":
    c_s = 32     # single-representation channel dim
    key = jax.random.PRNGKey(0)
    k_s, k_p, k_s2, k_b2 = jax.random.split(key, 4)
    params = init_params(k_p, c_s)

    # --- Case 1: tiny, single tile (matches the module's nominal usage) ---
    M, B = 8, 2
    s = jax.random.normal(k_s, (M, c_s), dtype=jnp.float32)
    batch_vec = jnp.array([0, 0, 0, 1, 1, 1, 1, 0], dtype=jnp.int32)
    out = jax.block_until_ready(lattice_output(s, batch_vec, params, B))
    ref = _reference(s, batch_vec, params, B)
    assert out.shape == (B, 6)
    # Tolerance covers bf16 streaming/MXU operands (division is exact now).
    assert jnp.allclose(out, ref, atol=1e-2, rtol=2e-2), float(jnp.max(jnp.abs(out - ref)))

    # --- Case 2: multi-tile, non-divisible M, 2-way core split + boundary masking ---
    M2, B2 = 1000, 3
    s2 = jax.random.normal(k_s2, (M2, c_s), dtype=jnp.float32)
    batch_vec2 = jax.random.randint(k_b2, (M2,), 0, B2, dtype=jnp.int32)
    out2 = jax.block_until_ready(lattice_output(s2, batch_vec2, params, B2, tile_m=256))
    ref2 = _reference(s2, batch_vec2, params, B2)
    assert out2.shape == (B2, 6)
    assert jnp.allclose(out2, ref2, atol=1e-2, rtol=2e-2), float(jnp.max(jnp.abs(out2 - ref2)))

    print("KERNEL_OK")
</pallas_src>

<mosaic_0001>
module attributes {stable_mosaic.version = 11 : i64} {
  func.func @_seg_sum_kernel(%arg0: i32, %arg1: i32, %arg2: memref<1x8xi32, #tpu.memory_space<vmem>>, %arg3: memref<8x32xbf16, #tpu.memory_space<vmem>>, %arg4: memref<1x8x32xf32, #tpu.memory_space<vmem>>, %arg5: memref<1x8x1xf32, #tpu.memory_space<vmem>>, %arg6: memref<8x8xi32, #tpu.memory_space<vmem>>) attributes {dimension_semantics = [#tpu.dimension_semantics<parallel>, #tpu.dimension_semantics<arbitrary>], iteration_bounds = array<i64: 1, 1>, scalar_prefetch = 0 : i64, scratch_operands = 1 : i64, tpu.core_type = #tpu.core_type<tc>, window_params = [{transform_indices = @transform_0, window_bounds = array<i64: 1, 8>}, {transform_indices = @transform_1, window_bounds = array<i64: 8, 32>}, {transform_indices = @transform_2, window_bounds = array<i64: 1, 8, 32>}, {transform_indices = @transform_3, window_bounds = array<i64: 1, 8, 1>}]} {
    %c0_i32 = arith.constant 0 : i32
    %0 = arith.cmpi eq, %arg1, %c0_i32 : i32
    %1 = arith.extui %0 : i1 to i32
    %c0_i32_0 = arith.constant 0 : i32
    %2 = arith.cmpi ne, %1, %c0_i32_0 : i32
    scf.if %2 {
      %cst_22 = arith.constant 0.000000e+00 : f32
      %46 = vector.broadcast %cst_22 : f32 to vector<8x32xf32>
      %c0_23 = arith.constant 0 : index
      %c0_24 = arith.constant 0 : index
      %c0_25 = arith.constant 0 : index
      %47 = vector.load %arg4[%c0_23, %c0_24, %c0_25] : memref<1x8x32xf32, #tpu.memory_space<vmem>>, vector<1x8x32xf32>
      %48 = vector.shape_cast %47 : vector<1x8x32xf32> to vector<8x32xf32>
      %49 = vector.shape_cast %46 : vector<8x32xf32> to vector<1x8x32xf32>
      tpu.vector_store %arg4[%c0_23, %c0_24, %c0_25], %49 {strides = array<i32>} : memref<1x8x32xf32, #tpu.memory_space<vmem>>, vector<1x8x32xf32>,
      %cst_26 = arith.constant 0.000000e+00 : f32
      %50 = vector.broadcast %cst_26 : f32 to vector<8x1xf32>
      %c0_27 = arith.constant 0 : index
      %c0_28 = arith.constant 0 : index
      %c0_29 = arith.constant 0 : index
      %51 = vector.load %arg5[%c0_27, %c0_28, %c0_29] : memref<1x8x1xf32, #tpu.memory_space<vmem>>, vector<1x8x1xf32>
      %52 = vector.shape_cast %51 : vector<1x8x1xf32> to vector<8x1xf32>
      %53 = vector.shape_cast %50 : vector<8x1xf32> to vector<1x8x1xf32>
      tpu.vector_store %arg5[%c0_27, %c0_28, %c0_29], %53 {strides = array<i32>} : memref<1x8x1xf32, #tpu.memory_space<vmem>>, vector<1x8x1xf32>,
      %54 = tpu.iota {dimensions = array<i32: 0>} : vector<8x8xi32>
      %c0_30 = arith.constant 0 : index
      %c0_31 = arith.constant 0 : index
      %55 = vector.load %arg6[%c0_30, %c0_31] : memref<8x8xi32, #tpu.memory_space<vmem>>, vector<8x8xi32>
      tpu.vector_store %arg6[%c0_30, %c0_31], %54 {strides = array<i32>} : memref<8x8xi32, #tpu.memory_space<vmem>>, vector<8x8xi32>,
    } else {
    }
    %c1_i32 = arith.constant 1 : i32
    %3 = arith.muli %arg0, %c1_i32 : i32
    %4 = arith.addi %3, %arg1 : i32
    %c8_i32 = arith.constant 8 : i32
    %5 = arith.muli %4, %c8_i32 : i32
    %6 = tpu.iota {dimensions = array<i32: 1>} : vector<1x8xi32>
    %7 = vector.broadcast %5 : i32 to vector<1x8xi32>
    %8 = arith.addi %7, %6 : vector<1x8xi32>
    %c8_i32_1 = arith.constant 8 : i32
    %9 = vector.broadcast %c8_i32_1 : i32 to vector<1x8xi32>
    %10 = arith.cmpi slt, %8, %9 : vector<1x8xi32>
    %11 = tpu.iota {dimensions = array<i32: 0>} : vector<8x1xi32>
    %12 = vector.broadcast %5 : i32 to vector<8x1xi32>
    %13 = arith.addi %12, %11 : vector<8x1xi32>
    %c8_i32_2 = arith.constant 8 : i32
    %14 = vector.broadcast %c8_i32_2 : i32 to vector<8x1xi32>
    %15 = arith.cmpi slt, %13, %14 : vector<8x1xi32>
    %c0 = arith.constant 0 : index
    %c0_3 = arith.constant 0 : index
    %16 = vector.load %arg2[%c0, %c0_3] : memref<1x8xi32, #tpu.memory_space<vmem>>, vector<1x8xi32>
    %c0_4 = arith.constant 0 : index
    %c0_5 = arith.constant 0 : index
    %17 = vector.load %arg6[%c0_4, %c0_5] : memref<8x8xi32, #tpu.memory_space<vmem>>, vector<8x8xi32>
    %18 = vector.broadcast %16 : vector<1x8xi32> to vector<8x8xi32>
    %19 = arith.cmpi eq, %17, %18 : vector<8x8xi32>
    %20 = vector.broadcast %10 : vector<1x8xi1> to vector<8x8xi1>
    %21 = arith.andi %19, %20 : vector<8x8xi1>
    %22 = arith.extui %21 : vector<8x8xi1> to vector<8x8xi32>
    %23 = arith.sitofp %22 : vector<8x8xi32> to vector<8x8xf32>
    %24 = arith.truncf %23 : vector<8x8xf32> to vector<8x8xbf16>
    %c0_6 = arith.constant 0 : index
    %c0_7 = arith.constant 0 : index
    %25 = vector.load %arg3[%c0_6, %c0_7] : memref<8x32xbf16, #tpu.memory_space<vmem>>, vector<8x32xbf16>
    %cst = arith.constant 0.000000e+00 : bf16
    %26 = vector.broadcast %cst : bf16 to vector<8x32xbf16>
    %27 = vector.shape_cast %15 : vector<8x1xi1> to vector<8x1xi1>
    %28 = vector.broadcast %27 : vector<8x1xi1> to vector<8x32xi1>
    %29 = arith.select %28, %25, %26 : vector<8x32xi1>, vector<8x32xbf16>
    %c0_8 = arith.constant 0 : index
    %c0_9 = arith.constant 0 : index
    %c0_10 = arith.constant 0 : index
    %30 = vector.load %arg4[%c0_8, %c0_9, %c0_10] : memref<1x8x32xf32, #tpu.memory_space<vmem>>, vector<1x8x32xf32>
    %31 = vector.shape_cast %30 : vector<1x8x32xf32> to vector<8x32xf32>
    %cst_11 = arith.constant dense<0.000000e+00> : vector<8x32xf32>
    %32 = tpu.matmul %24, %29, %cst_11 {dimension_numbers = #tpu.dot_dimension_numbers<[1], [0], [0], [1], [0, 0, 1, 1], [], []>} : vector<8x8xbf16>, vector<8x32xbf16>, vector<8x32xf32> -> vector<8x32xf32>
    %33 = arith.addf %31, %32 : vector<8x32xf32>
    %c0_12 = arith.constant 0 : index
    %c0_13 = arith.constant 0 : index
    %c0_14 = arith.constant 0 : index
    %34 = vector.load %arg4[%c0_12, %c0_13, %c0_14] : memref<1x8x32xf32, #tpu.memory_space<vmem>>, vector<1x8x32xf32>
    %35 = vector.shape_cast %34 : vector<1x8x32xf32> to vector<8x32xf32>
    %36 = vector.shape_cast %33 : vector<8x32xf32> to vector<1x8x32xf32>
    tpu.vector_store %arg4[%c0_12, %c0_13, %c0_14], %36 {strides = array<i32>} : memref<1x8x32xf32, #tpu.memory_space<vmem>>, vector<1x8x32xf32>,
    %c0_15 = arith.constant 0 : index
    %c0_16 = arith.constant 0 : index
    %c0_17 = arith.constant 0 : index
    %37 = vector.load %arg5[%c0_15, %c0_16, %c0_17] : memref<1x8x1xf32, #tpu.memory_space<vmem>>, vector<1x8x1xf32>
    %38 = vector.shape_cast %37 : vector<1x8x1xf32> to vector<8x1xf32>
    %39 = arith.extf %24 : vector<8x8xbf16> to vector<8x8xf32>
    %cst_18 = arith.constant dense<0.000000e+00> : vector<8xf32>
    %40 = vector.multi_reduction <add>, %39, %cst_18 [1] : vector<8x8xf32> to vector<8xf32>
    %41 = vector.shape_cast %40 : vector<8xf32> to vector<8x1xf32>
    %42 = arith.addf %38, %41 : vector<8x1xf32>
    %c0_19 = arith.constant 0 : index
    %c0_20 = arith.constant 0 : index
    %c0_21 = arith.constant 0 : index
    %43 = vector.load %arg5[%c0_19, %c0_20, %c0_21] : memref<1x8x1xf32, #tpu.memory_space<vmem>>, vector<1x8x1xf32>
    %44 = vector.shape_cast %43 : vector<1x8x1xf32> to vector<8x1xf32>
    %45 = vector.shape_cast %42 : vector<8x1xf32> to vector<1x8x1xf32>
    tpu.vector_store %arg5[%c0_19, %c0_20, %c0_21], %45 {strides = array<i32>} : memref<1x8x1xf32, #tpu.memory_space<vmem>>, vector<1x8x1xf32>,
    return
  }
  func.func @transform_0(%arg0: i32, %arg1: i32) -> (i32, i32) {
    %c1_i32 = arith.constant 1 : i32
    %0 = arith.muli %arg0, %c1_i32 : i32
    %1 = arith.addi %0, %arg1 : i32
    %c0_i32 = arith.constant 0 : i32
    %2 = arith.minsi %1, %c0_i32 : i32
    %c0_i32_0 = arith.constant 0 : i32
    %c0_i32_1 = arith.constant 0 : i32
    return %c0_i32_0, %2 : i32, i32
  }
  func.func @transform_1(%arg0: i32, %arg1: i32) -> (i32, i32) {
    %c1_i32 = arith.constant 1 : i32
    %0 = arith.muli %arg0, %c1_i32 : i32
    %1 = arith.addi %0, %arg1 : i32
    %c0_i32 = arith.constant 0 : i32
    %2 = arith.minsi %1, %c0_i32 : i32
    %c0_i32_0 = arith.constant 0 : i32
    %c0_i32_1 = arith.constant 0 : i32
    return %2, %c0_i32_0 : i32, i32
  }
  func.func @transform_2(%arg0: i32, %arg1: i32) -> (i32, i32, i32) {
    %c0_i32 = arith.constant 0 : i32
    %c0_i32_0 = arith.constant 0 : i32
    %c0_i32_1 = arith.constant 0 : i32
    return %arg0, %c0_i32, %c0_i32_0 : i32, i32, i32
  }
  func.func @transform_3(%arg0: i32, %arg1: i32) -> (i32, i32, i32) {
    %c0_i32 = arith.constant 0 : i32
    %c0_i32_0 = arith.constant 0 : i32
    %c0_i32_1 = arith.constant 0 : i32
    return %arg0, %c0_i32, %c0_i32_0 : i32, i32, i32
  }
}

</mosaic_0001>

<bundles_post_ra>
// kernel: tpu_custom_call.1
= control target key start
LH: loop header
LB: loop body
LE: loop exit
PB: predicated region body
PF: predicated region fallthrough
CT: control target
= control target key end

     0   :  { %9 = vsyncpa [#allocation4], 0  ;;  %s290_s0 = inlined_call_operand.hbm [shape: s32[1,8], index: 0, kind: input, shape index: {}]   ;;  %s291_s1 = inlined_call_operand.hbm [shape: bf16[8,32], index: 1, kind: input, shape index: {}]   ;;  %s292_s2 = inlined_call_operand.hbm [shape: f32[1,8,32], index: 2, kind: output, shape index: {0}]   ;;  %s293_s3 = inlined_call_operand.vmem [shape: f32[1,8,1], index: 3, kind: output, shape index: {1}]  }
   0x1   :  { %10 = vsyncpa [#allocation7], 0 }
   0x2   :  { %11 = vsyncpa [#allocation5], 0  ;;  %s21_s14 = sshll.u32 %s290_s0, 4  ;;  %s240_s15 = smov [#allocation3]   ;;  %s22_s14 = int_to_ptr.hbm [resolvable:$true] %s21_s14 }
   0x3   :  { %s23_s16 = sshll.u32 %s240_s15, 4  ;;  %s37_s19 = sshll.u32 %s291_s1, 4  ;;  %s24_s16 = int_to_ptr.vmem [resolvable:$true] %s23_s16  ;;  %s38_s19 = int_to_ptr.hbm [resolvable:$true] %s37_s19 }
   0x4   :  { %26 = dma.hbm_to_vmem [thread:$0]  %s22_s14, 16, %s24_s16, [#allocation4]  }
   0x5   :  { %s241_s20 = smov [#allocation6]  }
   0x6   :  { %s39_s21 = sshll.u32 %s241_s20, 4  ;;  %s40_s21 = int_to_ptr.vmem [resolvable:$true] %s39_s21 }
   0x7   :  { %42 = dma.hbm_to_vmem [thread:$0]  %s38_s19, 64, %s40_s21, [#allocation7]  }
   0x8   :  { %234 = dma.done.wait [#allocation4], 16  }
   0x9   :  { %235 = vsyncadd [#allocation4], 4294967280 }
   0xa   :  { %236 = dma.done.wait [#allocation7], 64  }
   0xb   :  { %237 = vsyncadd [#allocation7], 4294967232  ;;  %vm62_vm0 = vcmask 261120   ;;  %v242_v0 = vmov 0.0   ;;  %vm64_vm1 = vcmask 7168   ;;  %v66_v1 = vlaneseq  ;;  %s244_s26 = smov [#allocation8]  }
   0xc   :  { %63 = vst.msk [vmem:[#allocation8] sm:$0xff] %vm62_vm0, %v242_v0  ;;  %vm68_vm2 = vcmask 64512   ;;  %vm243_vm3 = vmmov 1   ;;  %vm101_vm5 = vcmask 1043456   ;;  %v91_v3 = vld [vmem:[#allocation6] sm:$0xf] }
   0xd   :  { %65 = vst.msk [vmem:[%s293_s3] sm:$0xff] %vm64_vm1, %v242_v0  ;;  %v67_v2 = vshrl.u32 %v66_v1, 7  ;;  %vm94_vm4 = vmpackc.low %vm243_vm3, %vm243_vm3  ;;  %v73_v4 = vand.u32 127, %v66_v1  ;;  %v161_v7 = vld [vmem:[#allocation3] ss:$0 sm:$0xff]  ;;  %s134_s27 = sshll.u32 %s244_s26, 4  ;;  %s135_s27 = int_to_ptr.vmem [resolvable:$true] %s134_s27 }
   0xe   :  { %v95_v5 = vsel %vm94_vm4, %v91_v3, 0  ;;  %s136_s30 = sshll.u32 %s292_s2, 4  ;;  %s137_s30 = int_to_ptr.hbm [resolvable:$true] %s136_s30 }
   0xf   :  { %69 = vst.msk [vmem:[#allocation2] sm:$0xff] %vm68_vm2, %v67_v2  ;;  %v103_v6 = vsel %vm101_vm5, %v95_v5, 0  ;;  %vm76_vm6 = vcmp.lt.s32.totalorder %v73_v4, 8 }
  0x10   :  { %112 = vmatpush.bf16.msra.mxu0 %v103_v6 }
  0x13   :  { %v96_v15 = vld [vmem:[#allocation8] sm:$0xff] }
  0x14   :  { %v121_v12 = vld [vmem:[%s293_s3] sm:$0xff] }
  0x16   :  { %v82_v8 = vld [vmem:[#allocation2] sm:$0xff] }
  0x17   :  { %vm84_vm7 = vcmp.eq.s32.totalorder %v82_v8, %v161_v7 }
  0x18   :  { %vm87_vm8 = vmand %vm84_vm7, %vm76_vm6 }
  0x19   :  { %v154_v9 = vsel %vm87_vm8, 1.0, %v242_v0 }
  0x1a   :  { %v90_v10 = vpack.c.bf16 %v154_v9, %v154_v9  ;;  %v123_v11 = vsel %vm68_vm2, %v154_v9, 0.0 }
  0x1b   :  { %124 = vadd.xlane.f32.xlu0 %v123_v11 }
  0x1c   :  { %155 = vmatmul.msk.bf16.vlgmr.msra.gmra.mxu0 %vm68_vm2, %v90_v10 }
  0x8e   :  { %v125_v13 = vpop.xlane.xlu0 %124 }
  0x8f   :  { %v126_v14 = vadd.f32 %v125_v13, %v121_v12 }
  0x91   :  { %128 = vst.msk [vmem:[%s293_s3] sm:$0xff] %vm64_vm1, %v126_v14 }
  0x99   :  { %v114_v16 = vpop.f32.mrf.mxu0 }
  0x9a   :  { %v118_v17 = vadd.f32 %v114_v16, %v96_v15 }
  0x9c   :  { %120 = vst.msk [vmem:[#allocation8] sm:$0xff] %vm62_vm0, %v118_v17 }
  0x9d   :  { %139 = dma.vmem_to_hbm [thread:$0]  %s135_s27, 128, %s137_s30, [#allocation5]  }
  0xa1   :  { %v116_v18 = vpop.f32.mrf.mxu0 }
  0xa2   :  { %238 = dma.done.wait [#allocation5], 128  }
  0xa3   :  { %239 = vsyncadd [#allocation5], 4294967168 }
  0xa4   :  { %148 = vsyncpa [#allocation4], 1 }
  0xa5   :  { %149 = vsyncpa [#allocation7], 1 }
  0xa6   :  { %150 = vsyncpa [#allocation5], 1 }

</bundles_post_ra>
